<compile_context>
chip_gen: v7x
topology: tpu7x:2x2x1
jax: 0.10.0
libtpu: 0.0.40
codegen_flags: <defaults>
</compile_context>

<pallas_src>
import jax
import jax.numpy as jnp
from jax.experimental import pallas as pl
from jax.experimental.pallas import tpu as pltpu

EPS = 1e-5
_STATS_ROWS = 8  # sublane-aligned rows for the per-tile (sum, sumsq) outputs


# --------------------------------------------------------------------------------------
# helpers
# --------------------------------------------------------------------------------------
def _vmem_budget():
    """~50% of the chip's physical VMEM (64 MiB on v7x, 128 MiB on v5e/v6e)."""
    cap = 64 << 20
    try:
        info = pltpu.get_tpu_info()
        cap = int(getattr(info, "vmem_capacity_bytes", cap)) or cap
    except Exception:
        pass
    return max(16 << 20, cap // 2)


_VMEM_BUDGET = _vmem_budget()


def _cparams(sems, block_bytes):
    vmem_limit = int(min(max(8 * int(block_bytes), 16 << 20), _VMEM_BUDGET))
    return pltpu.CompilerParams(dimension_semantics=sems, vmem_limit_bytes=vmem_limit)


def _row_target(bytes_per_row, budget=4 << 20):
    """Row-tile target (512..2048-ish) from a per-block VMEM budget."""
    return int(min(2048, max(256, budget // max(int(bytes_per_row), 1))))


def _pick_row_tile(m, target):
    """Largest row tile <= target that is a multiple of 8 and divides m (or m itself)."""
    if m <= target:
        return m
    t = (min(target, m) // 8) * 8
    while t >= 8:
        if m % t == 0:
            return t
        t -= 8
    return m


def _pick_div(n, target):
    """Largest divisor of n that is <= target."""
    t = max(1, min(int(target), n))
    while n % t:
        t -= 1
    return t


def _partial_stats(y2d):
    """(rows, C) f32 -> (_STATS_ROWS, C): row0 = sum, row1 = sum of squares, rest 0."""
    s = jnp.sum(y2d, axis=0, keepdims=True)
    sq = jnp.sum(y2d * y2d, axis=0, keepdims=True)
    pad = jnp.zeros((_STATS_ROWS - 2, y2d.shape[-1]), jnp.float32)
    return jnp.concatenate([s, sq, pad], axis=0)


def _finalize_bn(stats, count, gamma, beta):
    """Reduce per-tile partial stats -> per-channel (scale, shift) for y*scale+shift."""
    c = stats.shape[-1]
    s = stats.reshape(-1, _STATS_ROWS, c).sum(axis=0)
    mean = s[0] / count
    # E[x^2]-E[x]^2 can dip slightly negative in fp: clamp.
    # TODO(synk): use shifted / Welford-merged sums if BN precision matters at very
    # large batch*spatial counts.
    var = jnp.maximum(s[1] / count - mean * mean, 0.0)
    inv = jax.lax.rsqrt(var + EPS)
    scale = gamma.reshape(-1) * inv
    shift = beta.reshape(-1) - mean * scale
    return (scale.reshape(1, c).astype(jnp.float32),
            shift.reshape(1, c).astype(jnp.float32))


# --------------------------------------------------------------------------------------
# kernels
# --------------------------------------------------------------------------------------
def _conv1x1_kernel(x_ref, w_ref, y_ref, stats_ref):
    """y = x @ w (1x1 conv over channels) + f32 partial BN stats; y stored bf16."""
    y = jnp.dot(x_ref[...].astype(jnp.bfloat16), w_ref[...],
                preferred_element_type=jnp.float32)
    stats_ref[...] = _partial_stats(y).reshape(stats_ref.shape)   # stats BEFORE downcast
    y_ref[...] = y.astype(y_ref.dtype)


def _bnrelu_conv1x1_kernel(x_ref, w_ref, scale_ref, shift_ref, y_ref, stats_ref):
    """y = relu(x*scale + shift) @ w  (BN math f32) + f32 partial stats; y stored bf16."""
    a = jnp.maximum(x_ref[...].astype(jnp.float32) * scale_ref[...] + shift_ref[...], 0.0)
    y = jnp.dot(a.astype(jnp.bfloat16), w_ref[...], preferred_element_type=jnp.float32)
    stats_ref[...] = _partial_stats(y).reshape(stats_ref.shape)
    y_ref[...] = y.astype(y_ref.dtype)


def _bnrelu_conv3x3_kernel(xm_ref, xt_ref, xb_ref, w_ref, scale_ref, shift_ref,
                           y_ref, stats_ref):
    """y = conv3x3(relu(x*scale+shift)), stride 1, pad 1, on one H-tile with 1-row halos.

    Structure (no im2col buffer): taps grouped by kx -> 3 matmuls with K = 3C over the
    ky-stacked rows; the +-1 column (kx) shift is applied to the matmul OUTPUT via
    slice + zero-column concat into an f32 accumulator.
    """
    th, wd = xm_ref.shape[1], xm_ref.shape[2]
    cout = w_ref.shape[2]
    j = pl.program_id(1)
    last = pl.num_programs(1) - 1
    scale = scale_ref[...]
    shift = shift_ref[...]

    def bnrelu(v):
        return jnp.maximum(v.astype(jnp.float32) * scale + shift, 0.0)

    am = bnrelu(xm_ref[0]).astype(jnp.bfloat16)                                 # (TH,W,C)
    # Halo rows: zero them at the image top/bottom (padding=1 semantics).
    at = (bnrelu(xt_ref[0]) * (j > 0).astype(jnp.float32)).astype(jnp.bfloat16)    # (1,W,C)
    ab = (bnrelu(xb_ref[0]) * (j < last).astype(jnp.float32)).astype(jnp.bfloat16)  # (1,W,C)

    a = jnp.concatenate([at, am, ab], axis=0)                                   # (TH+2,W,C)
    # ky-stack along channels -> contraction K = 3C (keeps 256-deep MXU mostly full).
    g = jnp.concatenate([a[0:th], a[1:th + 1], a[2:th + 2]], axis=-1)           # (TH,W,3C)
    g2 = g.reshape(th * wd, g.shape[-1])                                        # bf16 LHS

    t0 = jnp.dot(g2, w_ref[0], preferred_element_type=jnp.float32).reshape(th, wd, cout)
    t1 = jnp.dot(g2, w_ref[1], preferred_element_type=jnp.float32).reshape(th, wd, cout)
    t2 = jnp.dot(g2, w_ref[2], preferred_element_type=jnp.float32).reshape(th, wd, cout)

    zc = jnp.zeros((th, 1, cout), jnp.float32)
    y = (t1
         + jnp.concatenate([zc, t0[:, :wd - 1, :]], axis=1)    # kx=0 contributes to w+1
         + jnp.concatenate([t2[:, 1:, :], zc], axis=1))        # kx=2 contributes to w-1

    stats_ref[...] = _partial_stats(y.reshape(th * wd, cout)).reshape(stats_ref.shape)
    y_ref[...] = y.reshape(y_ref.shape).astype(y_ref.dtype)


def _bn_add_relu_kernel(y_ref, res_ref, scale_ref, shift_ref, out_ref):
    """out = relu(y*scale + shift + residual)  (all elementwise math in f32)."""
    y = y_ref[...].astype(jnp.float32) * scale_ref[...] + shift_ref[...]
    out_ref[...] = jnp.maximum(y + res_ref[...], 0.0)


# --------------------------------------------------------------------------------------
# forward
# --------------------------------------------------------------------------------------
def resblk3_forward_nhwc(x_nhwc, params):
    """Primary entry point. x_nhwc: (N,H,W,Cin) float32, Cin == 4*chs (identity
    residual; stride=1, downsample=None -- the module defaults)."""
    w1, w2, w3, g1, b1, g2, b2, g3, b3 = params
    n, h, w, cin = x_nhwc.shape
    c = w1.shape[1]
    cout = w3.shape[1]
    assert cout == cin, "identity residual path needs ichs == 4*chs"

    m = n * h * w
    f32, bf16 = jnp.float32, jnp.bfloat16

    x = x_nhwc.astype(f32)
    x_flat = x.reshape(m, cin)                       # free reshape (contiguous NHWC)

    # MXU operands in bf16 (f32 accumulation).  conv2 weights arranged (kx, ky*Cin, Cout).
    w1b = w1.astype(bf16)                                                  # (Cin, C)
    w2g = jnp.transpose(w2, (1, 0, 2, 3)).reshape(3, 3 * c, c).astype(bf16)  # (3, 3C, C)
    w3b = w3.astype(bf16)                                                  # (C, 4C)

    # ---- K1: conv1 (1x1) + partial stats ----------------------------------------------
    mt1 = _pick_row_tile(m, _row_target(6 * cin + 6 * c))
    ns1 = m // mt1
    blk1 = mt1 * (6 * cin + 6 * c) + 2 * cin * c + 4 * _STATS_ROWS * c
    y1, s1 = pl.pallas_call(
        _conv1x1_kernel,
        grid=(ns1,),
        in_specs=(
            pl.BlockSpec((mt1, cin), lambda i: (i, 0)),
            pl.BlockSpec((cin, c), lambda i: (0, 0)),
        ),
        out_specs=(
            pl.BlockSpec((mt1, c), lambda i: (i, 0)),
            pl.BlockSpec((1, _STATS_ROWS, c), lambda i: (i, 0, 0)),
        ),
        out_shape=(
            jax.ShapeDtypeStruct((m, c), bf16),
            jax.ShapeDtypeStruct((ns1, _STATS_ROWS, c), f32),
        ),
        compiler_params=_cparams(("parallel",), blk1),
        cost_estimate=pl.CostEstimate(
            flops=2 * m * cin * c, transcendentals=0,
            bytes_accessed=4 * m * cin + 2 * m * c + 2 * cin * c),
    )(x_flat, w1b)
    sc1, sh1 = _finalize_bn(s1, m, g1, b1)

    # ---- K2: bn1 + relu + conv2 (3x3, kx-grouped matmuls) + partial stats --------------
    y1_s = y1.reshape(n, h, w, c)
    budget_rows = max(1, (2 << 20) // max(48 * w * c, 1))
    target_rows = h if h < 8 else max(h // 2, 1)      # >=2 H-tiles when possible (v7x 2 TC)
    th2 = _pick_div(h, min(target_rows, budget_rows))
    nh2 = h // th2
    blk2 = 48 * th2 * w * c + 2 * 9 * c * c + 4 * _STATS_ROWS * c + 8 * c
    y2, s2 = pl.pallas_call(
        _bnrelu_conv3x3_kernel,
        grid=(n, nh2),
        in_specs=(
            pl.BlockSpec((1, th2, w, c), lambda i, j: (i, j, 0, 0)),
            # 1-row halos above/below the tile (clamped at image edges; zeroed in-kernel).
            pl.BlockSpec((1, 1, w, c),
                         lambda i, j: (i, jnp.maximum(j * th2 - 1, 0), 0, 0)),
            pl.BlockSpec((1, 1, w, c),
                         lambda i, j: (i, jnp.minimum(j * th2 + th2, h - 1), 0, 0)),
            pl.BlockSpec((3, 3 * c, c), lambda i, j: (0, 0, 0)),
            pl.BlockSpec((1, c), lambda i, j: (0, 0)),
            pl.BlockSpec((1, c), lambda i, j: (0, 0)),
        ),
        out_specs=(
            pl.BlockSpec((1, th2, w, c), lambda i, j: (i, j, 0, 0)),
            pl.BlockSpec((1, 1, _STATS_ROWS, c), lambda i, j: (i, j, 0, 0)),
        ),
        out_shape=(
            jax.ShapeDtypeStruct((n, h, w, c), bf16),
            jax.ShapeDtypeStruct((n, nh2, _STATS_ROWS, c), f32),
        ),
        compiler_params=_cparams(("parallel", "parallel"), blk2),
        cost_estimate=pl.CostEstimate(
            flops=2 * m * 9 * c * c, transcendentals=0,
            bytes_accessed=4 * m * c + 2 * 9 * c * c),
    )(y1_s, y1_s, y1_s, w2g, sc1, sh1)
    sc2, sh2 = _finalize_bn(s2, m, g2, b2)

    # ---- K3: bn2 + relu + conv3 (1x1, 4x expand) + partial stats -----------------------
    y2_flat = y2.reshape(m, c)
    mt3 = _pick_row_tile(m, _row_target(8 * c + 6 * cout))
    ns3 = m // mt3
    blk3 = mt3 * (8 * c + 6 * cout) + 2 * c * cout + 4 * _STATS_ROWS * cout
    y3, s3 = pl.pallas_call(
        _bnrelu_conv1x1_kernel,
        grid=(ns3,),
        in_specs=(
            pl.BlockSpec((mt3, c), lambda i: (i, 0)),
            pl.BlockSpec((c, cout), lambda i: (0, 0)),
            pl.BlockSpec((1, c), lambda i: (0, 0)),
            pl.BlockSpec((1, c), lambda i: (0, 0)),
        ),
        out_specs=(
            pl.BlockSpec((mt3, cout), lambda i: (i, 0)),
            pl.BlockSpec((1, _STATS_ROWS, cout), lambda i: (i, 0, 0)),
        ),
        out_shape=(
            jax.ShapeDtypeStruct((m, cout), bf16),
            jax.ShapeDtypeStruct((ns3, _STATS_ROWS, cout), f32),
        ),
        compiler_params=_cparams(("parallel",), blk3),
        cost_estimate=pl.CostEstimate(
            flops=2 * m * c * cout, transcendentals=0,
            bytes_accessed=2 * m * (c + cout) + 2 * c * cout),
    )(y2_flat, w3b, sc2, sh2)
    sc3, sh3 = _finalize_bn(s3, m, g3, b3)

    # ---- K4: bn3 + identity residual + relu --------------------------------------------
    # TODO(synk): input_output_aliases for y3 was skipped because y3 is stored bf16 while
    # the block output is f32 (dtype mismatch); bf16 storage is the bigger win.
    mt4 = _pick_row_tile(m, _row_target(14 * cout))
    ns4 = m // mt4
    blk4 = 14 * mt4 * cout
    out_flat = pl.pallas_call(
        _bn_add_relu_kernel,
        grid=(ns4,),
        in_specs=(
            pl.BlockSpec((mt4, cout), lambda i: (i, 0)),   # y3 (bf16)
            pl.BlockSpec((mt4, cout), lambda i: (i, 0)),   # residual x (f32)
            pl.BlockSpec((1, cout), lambda i: (0, 0)),
            pl.BlockSpec((1, cout), lambda i: (0, 0)),
        ),
        out_specs=pl.BlockSpec((mt4, cout), lambda i: (i, 0)),
        out_shape=jax.ShapeDtypeStruct((m, cout), f32),
        compiler_params=_cparams(("parallel",), blk4),
        cost_estimate=pl.CostEstimate(
            flops=3 * m * cout, transcendentals=0,
            bytes_accessed=10 * m * cout),
    )(y3, x_flat, sc3, sh3)
    return out_flat.reshape(n, h, w, cout)


def resblk3_forward(x_nchw, params):
    """NCHW wrapper matching the PyTorch Conv2d convention.
    TODO(synk): when embedded in an NHWC network, call resblk3_forward_nhwc directly to
    avoid these two layout round trips through HBM."""
    x = jnp.transpose(x_nchw, (0, 2, 3, 1))
    y = resblk3_forward_nhwc(x, params)
    return jnp.transpose(y, (0, 3, 1, 2))


# --------------------------------------------------------------------------------------
# pure-JAX reference (correctness check only)
# --------------------------------------------------------------------------------------
def _ref_forward(x_nchw, params):
    w1, w2, w3, g1, b1, g2, b2, g3, b3 = params
    x = jnp.transpose(x_nchw, (0, 2, 3, 1)).astype(jnp.float32)

    def bn(y, g, b, relu=True):
        mean = jnp.mean(y, axis=(0, 1, 2), keepdims=True)
        var = jnp.mean((y - mean) ** 2, axis=(0, 1, 2), keepdims=True)
        y = (y - mean) / jnp.sqrt(var + EPS)
        y = y * g.reshape(1, 1, 1, -1) + b.reshape(1, 1, 1, -1)
        return jnp.maximum(y, 0.0) if relu else y

    y = jnp.einsum('nhwc,cd->nhwd', x, w1)
    y = bn(y, g1, b1)
    y = jax.lax.conv_general_dilated(
        y, w2, window_strides=(1, 1), padding='SAME',
        dimension_numbers=('NHWC', 'HWIO', 'NHWC'))
    y = bn(y, g2, b2)
    y = jnp.einsum('nhwc,cd->nhwd', y, w3)
    y = bn(y, g3, b3, relu=False)
    y = jnp.maximum(y + x, 0.0)
    return jnp.transpose(y, (0, 3, 1, 2))


if __name__ == "__main__":
    key = jax.random.PRNGKey(0)
    # ichs = 16, chs = 4  =>  4*chs == 16 == ichs, so the identity residual is valid.
    N, Cin, H, W = 2, 16, 16, 16
    C = 4

    k_x, k_w1, k_w2, k_w3 = jax.random.split(key, 4)
    x = jax.random.normal(k_x, (N, Cin, H, W), jnp.float32)

    # Parameter layouts (derived from the nn.Module's __init__):
    #   conv1.weight (C, Cin, 1, 1)  -> stored as (Cin, C)
    #   conv2.weight (C, C, 3, 3)    -> stored as (3, 3, C, C)  [kh, kw, in, out]
    #   conv3.weight (4C, C, 1, 1)   -> stored as (C, 4C)
    #   BatchNorm weight/bias: ones / zeros (PyTorch default init)
    w1 = jax.random.normal(k_w1, (Cin, C), jnp.float32) / jnp.sqrt(Cin)
    w2 = jax.random.normal(k_w2, (3, 3, C, C), jnp.float32) / jnp.sqrt(9 * C)
    w3 = jax.random.normal(k_w3, (C, 4 * C), jnp.float32) / jnp.sqrt(C)
    g1, b1 = jnp.ones((1, C), jnp.float32), jnp.zeros((1, C), jnp.float32)
    g2, b2 = jnp.ones((1, C), jnp.float32), jnp.zeros((1, C), jnp.float32)
    g3, b3 = jnp.ones((1, 4 * C), jnp.float32), jnp.zeros((1, 4 * C), jnp.float32)
    params = (w1, w2, w3, g1, b1, g2, b2, g3, b3)

    y = resblk3_forward(x, params)
    jax.block_until_ready(y)

    y_ref = _ref_forward(x, params)
    assert y.shape == (N, 4 * C, H, W)
    # bf16 MXU operands + bf16 intermediate storage vs f32 reference => relaxed tolerance.
    assert jnp.allclose(y, y_ref, rtol=5e-2, atol=7.5e-2), "mismatch vs JAX reference"

    print("KERNEL_OK")
</pallas_src>

<mosaic_0001>
module attributes {stable_mosaic.version = 11 : i64} {
  func.func @_conv1x1_kernel(%arg0: i32, %arg1: memref<512x16xf32, #tpu.memory_space<vmem>>, %arg2: memref<16x4xbf16, #tpu.memory_space<vmem>>, %arg3: memref<512x4xbf16, #tpu.memory_space<vmem>>, %arg4: memref<1x8x4xf32, #tpu.memory_space<vmem>>) attributes {dimension_semantics = [#tpu.dimension_semantics<parallel>], iteration_bounds = array<i64: 1>, scalar_prefetch = 0 : i64, scratch_operands = 0 : i64, tpu.core_type = #tpu.core_type<tc>, window_params = [{transform_indices = @transform_0, window_bounds = array<i64: 512, 16>}, {pipeline_mode = #tpu.pipeline_mode<synchronous>, transform_indices = @transform_1, window_bounds = array<i64: 16, 4>}, {transform_indices = @transform_2, window_bounds = array<i64: 512, 4>}, {transform_indices = @transform_3, window_bounds = array<i64: 1, 8, 4>}]} {
    %c0 = arith.constant 0 : index
    %c0_0 = arith.constant 0 : index
    %0 = vector.load %arg1[%c0, %c0_0] : memref<512x16xf32, #tpu.memory_space<vmem>>, vector<512x16xf32>
    %1 = arith.truncf %0 : vector<512x16xf32> to vector<512x16xbf16>
    %c0_1 = arith.constant 0 : index
    %c0_2 = arith.constant 0 : index
    %2 = vector.load %arg2[%c0_1, %c0_2] : memref<16x4xbf16, #tpu.memory_space<vmem>>, vector<16x4xbf16>
    %cst = arith.constant dense<0.000000e+00> : vector<512x4xf32>
    %3 = tpu.matmul %1, %2, %cst {dimension_numbers = #tpu.dot_dimension_numbers<[1], [0], [0], [1], [0, 0, 1, 1], [], []>} : vector<512x16xbf16>, vector<16x4xbf16>, vector<512x4xf32> -> vector<512x4xf32>
    %cst_3 = arith.constant dense<0.000000e+00> : vector<4xf32>
    %4 = vector.multi_reduction <add>, %3, %cst_3 [0] : vector<512x4xf32> to vector<4xf32>
    %5 = vector.shape_cast %4 : vector<4xf32> to vector<1x4xf32>
    %6 = arith.mulf %3, %3 : vector<512x4xf32>
    %cst_4 = arith.constant dense<0.000000e+00> : vector<4xf32>
    %7 = vector.multi_reduction <add>, %6, %cst_4 [0] : vector<512x4xf32> to vector<4xf32>
    %8 = vector.shape_cast %7 : vector<4xf32> to vector<1x4xf32>
    %cst_5 = arith.constant 0.000000e+00 : f32
    %9 = vector.broadcast %cst_5 : f32 to vector<6x4xf32>
    %10 = tpu.concatenate %5, %8, %9 in 0 : vector<1x4xf32>, vector<1x4xf32>, vector<6x4xf32> -> vector<8x4xf32>
    %11 = vector.shape_cast %10 : vector<8x4xf32> to vector<1x8x4xf32>
    %c0_6 = arith.constant 0 : index
    %c0_7 = arith.constant 0 : index
    %c0_8 = arith.constant 0 : index
    %12 = vector.load %arg4[%c0_6, %c0_7, %c0_8] : memref<1x8x4xf32, #tpu.memory_space<vmem>>, vector<1x8x4xf32>
    tpu.vector_store %arg4[%c0_6, %c0_7, %c0_8], %11 {strides = array<i32>} : memref<1x8x4xf32, #tpu.memory_space<vmem>>, vector<1x8x4xf32>,
    %13 = arith.truncf %3 : vector<512x4xf32> to vector<512x4xbf16>
    %c0_9 = arith.constant 0 : index
    %c0_10 = arith.constant 0 : index
    %14 = vector.load %arg3[%c0_9, %c0_10] : memref<512x4xbf16, #tpu.memory_space<vmem>>, vector<512x4xbf16>
    tpu.vector_store %arg3[%c0_9, %c0_10], %13 {strides = array<i32>} : memref<512x4xbf16, #tpu.memory_space<vmem>>, vector<512x4xbf16>,
    return
  }
  func.func @transform_0(%arg0: i32) -> (i32, i32) {
    %c0_i32 = arith.constant 0 : i32
    %c0_i32_0 = arith.constant 0 : i32
    return %arg0, %c0_i32 : i32, i32
  }
  func.func @transform_1(%arg0: i32) -> (i32, i32) {
    %c0_i32 = arith.constant 0 : i32
    %c0_i32_0 = arith.constant 0 : i32
    %c0_i32_1 = arith.constant 0 : i32
    return %c0_i32, %c0_i32_0 : i32, i32
  }
  func.func @transform_2(%arg0: i32) -> (i32, i32) {
    %c0_i32 = arith.constant 0 : i32
    %c0_i32_0 = arith.constant 0 : i32
    return %arg0, %c0_i32 : i32, i32
  }
  func.func @transform_3(%arg0: i32) -> (i32, i32, i32) {
    %c0_i32 = arith.constant 0 : i32
    %c0_i32_0 = arith.constant 0 : i32
    %c0_i32_1 = arith.constant 0 : i32
    return %arg0, %c0_i32, %c0_i32_0 : i32, i32, i32
  }
}

</mosaic_0001>

<bundles_post_ra>
// kernel: tpu_custom_call.1
= control target key start
LH: loop header
LB: loop body
LE: loop exit
PB: predicated region body
PF: predicated region fallthrough
CT: control target
= control target key end

     0   :  { %vm118_vm0 = vcmask 130048   ;;  %vm1096_vm1 = vcmask 27648   ;;  %vm504_vm2 = vcmask 31744   ;;  %vm835_vm3 = vcmask 1040384   ;;  %s2291_s1 = inlined_call_operand.vmem [shape: bf16[16,4], index: 1, kind: input, shape index: {}]   ;;  %s2292_s0 = inlined_call_operand.vmem [shape: f32[512,16], index: 0, kind: input, shape index: {}]   ;;  %s2293_s2 = inlined_call_operand.vmem [shape: bf16[512,4], index: 2, kind: output, shape index: {0}]   ;;  %s2294_s3 = inlined_call_operand.vmem [shape: f32[1,8,4], index: 3, kind: output, shape index: {1}]  }
   0x1   :  { %v1431_v0 = vld [vmem:[%s2291_s1] sm:$0xff]   ;;  %v15_v2 = vld [vmem:[%s2292_s0 + $0x8] sm:$0xff]  ;;  %v16_v3 = vld [vmem:[%s2292_s0 + $0x10] sm:$0xff]  ;;  %vm837_vm4 = vcmask 1041408  }
   0x2   :  { %v14_v1 = vld [vmem:[%s2292_s0] sm:$0xff]  ;;  %1363 = vmatprep.subr.bf16.mxu0 %v1431_v0  ;;  %v17_v5 = vld [vmem:[%s2292_s0 + $0x18] sm:$0xff]  ;;  %v19_v7 = vld [vmem:[%s2292_s0 + $0x28] sm:$0xff]  ;;  %1429 = vmatprep.subr.bf16.mxu1 %v1431_v0 }
   0x3   :  { %v78_v4 = vpack.c.bf16 %v15_v2, %v14_v1  ;;  %v18_v6 = vld [vmem:[%s2292_s0 + $0x20] sm:$0xff]  ;;  %1364 = vmatpush3.bf16.msra.mxu0 %v1431_v0  ;;  %v79_v8 = vpack.c.bf16 %v17_v5, %v16_v3  ;;  %1430 = vmatpush3.bf16.msra.mxu1 %v1431_v0  ;;  %v20_v10 = vld [vmem:[%s2292_s0 + $0x30] sm:$0xff]  ;;  %v21_v11 = vld [vmem:[%s2292_s0 + $0x38] sm:$0xff] }
   0x4   :  { %v80_v9 = vpack.c.bf16 %v19_v7, %v18_v6  ;;  %v22_v12 = vld [vmem:[%s2292_s0 + $0x40] sm:$0xff]  ;;  %v23_v13 = vld [vmem:[%s2292_s0 + $0x48] sm:$0xff]  ;;  %v81_v14 = vpack.c.bf16 %v21_v11, %v20_v10  ;;  %v48_v18 = vld [vmem:[%s2292_s0 + $0x110] sm:$0xff] }
   0x5   :  { %1365 = vmatprep.mubr.msk.bf16.mxu0 %vm118_vm0, %v78_v4  ;;  %v82_v15 = vpack.c.bf16 %v23_v13, %v22_v12  ;;  %v46_v16 = vld [vmem:[%s2292_s0 + $0x100] sm:$0xff]  ;;  %v47_v17 = vld [vmem:[%s2292_s0 + $0x108] sm:$0xff]  ;;  %v49_v19 = vld [vmem:[%s2292_s0 + $0x118] sm:$0xff] }
   0x6   :  { %1366 = vmatmul.mubr.msk.bf16.vlgmr.msra.gmra.mrb[0].mxu0 %vm118_vm0, %v79_v8  ;;  %v94_v20 = vpack.c.bf16 %v47_v17, %v46_v16  ;;  %v95_v21 = vpack.c.bf16 %v49_v19, %v48_v18  ;;  %v50_v22 = vld [vmem:[%s2292_s0 + $0x120] sm:$0xff]  ;;  %v51_v23 = vld [vmem:[%s2292_s0 + $0x128] sm:$0xff]  ;;  %v24_v25 = vld [vmem:[%s2292_s0 + $0x50] sm:$0xff] }
   0x7   :  { %1369 = vmatprep.mubr.msk.bf16.mxu0 %vm118_vm0, %v80_v9  ;;  %v96_v24 = vpack.c.bf16 %v51_v23, %v50_v22  ;;  %v25_v26 = vld [vmem:[%s2292_s0 + $0x58] sm:$0xff]  ;;  %v26_v27 = vld [vmem:[%s2292_s0 + $0x60] sm:$0xff]  ;;  %v27_v28 = vld [vmem:[%s2292_s0 + $0x68] sm:$0xff] }
   0x8   :  { %1397 = vmatprep.mubr.msk.bf16.mxu1 %vm118_vm0, %v94_v20  ;;  %v52_v29 = vld [vmem:[%s2292_s0 + $0x130] sm:$0xff]  ;;  %v53_v30 = vld [vmem:[%s2292_s0 + $0x138] sm:$0xff]  ;;  %v83_v31 = vpack.c.bf16 %v25_v26, %v24_v25  ;;  %v54_v32 = vld [vmem:[%s2292_s0 + $0x140] sm:$0xff]  ;;  %v84_v34 = vpack.c.bf16 %v27_v28, %v26_v27 }
   0x9   :  { %1398 = vmatmul.mubr.msk.bf16.vlgmr.msra.gmra.mrb[0].mxu1 %vm118_vm0, %v95_v21  ;;  %v55_v33 = vld [vmem:[%s2292_s0 + $0x148] sm:$0xff]  ;;  %v97_v35 = vpack.c.bf16 %v53_v30, %v52_v29  ;;  %v28_v37 = vld [vmem:[%s2292_s0 + $0x70] sm:$0xff]  ;;  %v29_v38 = vld [vmem:[%s2292_s0 + $0x78] sm:$0xff] }
   0xa   :  { %1401 = vmatprep.mubr.msk.bf16.mxu1 %vm118_vm0, %v96_v24  ;;  %v98_v36 = vpack.c.bf16 %v55_v33, %v54_v32  ;;  %v30_v39 = vld [vmem:[%s2292_s0 + $0x80] sm:$0xff]  ;;  %v31_v40 = vld [vmem:[%s2292_s0 + $0x88] sm:$0xff]  ;;  %v56_v41 = vld [vmem:[%s2292_s0 + $0x150] sm:$0xff]  ;;  %v85_v43 = vpack.c.bf16 %v29_v38, %v28_v37 }
   0xb   :  { %v57_v42 = vld [vmem:[%s2292_s0 + $0x158] sm:$0xff]  ;;  %v58_v44 = vld [vmem:[%s2292_s0 + $0x160] sm:$0xff]  ;;  %v59_v45 = vld [vmem:[%s2292_s0 + $0x168] sm:$0xff]  ;;  %v86_v46 = vpack.c.bf16 %v31_v40, %v30_v39 }
   0xc   :  { %v99_v47 = vpack.c.bf16 %v57_v42, %v56_v41  ;;  %v100_v48 = vpack.c.bf16 %v59_v45, %v58_v44  ;;  %v32_v49 = vld [vmem:[%s2292_s0 + $0x90] sm:$0xff]  ;;  %v33_v50 = vld [vmem:[%s2292_s0 + $0x98] sm:$0xff]  ;;  %v34_v51 = vld [vmem:[%s2292_s0 + $0xa0] sm:$0xff] }
   0xd   :  { %v35_v52 = vld [vmem:[%s2292_s0 + $0xa8] sm:$0xff]  ;;  %v60_v53 = vld [vmem:[%s2292_s0 + $0x170] sm:$0xff]  ;;  %v61_v54 = vld [vmem:[%s2292_s0 + $0x178] sm:$0xff]  ;;  %v87_v55 = vpack.c.bf16 %v33_v50, %v32_v49 }
   0xe   :  { %1370 = vmatmul.mubr.msk.bf16.gmra.mrb[4].mxu0 %vm118_vm0, %v81_v14  ;;  %v62_v56 = vld [vmem:[%s2292_s0 + $0x180] sm:$0xff]  ;;  %v63_v57 = vld [vmem:[%s2292_s0 + $0x188] sm:$0xff]  ;;  %v88_v58 = vpack.c.bf16 %v35_v52, %v34_v51  ;;  %v101_v59 = vpack.c.bf16 %v61_v54, %v60_v53  ;;  %v36_v61 = vld [vmem:[%s2292_s0 + $0xb0] sm:$0xff] }
   0xf   :  { %1373 = vmatprep.mubr.msk.bf16.mxu0 %vm118_vm0, %v82_v15  ;;  %v102_v60 = vpack.c.bf16 %v63_v57, %v62_v56  ;;  %v37_v62 = vld [vmem:[%s2292_s0 + $0xb8] sm:$0xff]  ;;  %v38_v63 = vld [vmem:[%s2292_s0 + $0xc0] sm:$0xff]  ;;  %v39_v0 = vld [vmem:[%s2292_s0 + $0xc8] sm:$0xff] }
  0x10   :  { %v64_v1 = vld [vmem:[%s2292_s0 + $0x190] sm:$0xff]  ;;  %v65_v2 = vld [vmem:[%s2292_s0 + $0x198] sm:$0xff]  ;;  %v89_v3 = vpack.c.bf16 %v37_v62, %v36_v61  ;;  %v66_v4 = vld [vmem:[%s2292_s0 + $0x1a0] sm:$0xff]  ;;  %v90_v6 = vpack.c.bf16 %v39_v0, %v38_v63 }
  0x11   :  { %1402 = vmatmul.mubr.msk.bf16.gmra.mrb[4].mxu1 %vm118_vm0, %v97_v35  ;;  %v67_v5 = vld [vmem:[%s2292_s0 + $0x1a8] sm:$0xff]  ;;  %v103_v7 = vpack.c.bf16 %v65_v2, %v64_v1  ;;  %v40_v9 = vld [vmem:[%s2292_s0 + $0xd0] sm:$0xff]  ;;  %v41_v10 = vld [vmem:[%s2292_s0 + $0xd8] sm:$0xff] }
  0x12   :  { %1405 = vmatprep.mubr.msk.bf16.mxu1 %vm118_vm0, %v98_v36  ;;  %v104_v8 = vpack.c.bf16 %v67_v5, %v66_v4  ;;  %v42_v11 = vld [vmem:[%s2292_s0 + $0xe0] sm:$0xff]  ;;  %v43_v12 = vld [vmem:[%s2292_s0 + $0xe8] sm:$0xff]  ;;  %v68_v13 = vld [vmem:[%s2292_s0 + $0x1b0] sm:$0xff]  ;;  %v91_v15 = vpack.c.bf16 %v41_v10, %v40_v9 }
  0x13   :  { %v69_v14 = vld [vmem:[%s2292_s0 + $0x1b8] sm:$0xff]  ;;  %v70_v16 = vld [vmem:[%s2292_s0 + $0x1c0] sm:$0xff]  ;;  %v71_v17 = vld [vmem:[%s2292_s0 + $0x1c8] sm:$0xff]  ;;  %v92_v18 = vpack.c.bf16 %v43_v12, %v42_v11 }
  0x14   :  { %v105_v19 = vpack.c.bf16 %v69_v14, %v68_v13  ;;  %v106_v20 = vpack.c.bf16 %v71_v17, %v70_v16  ;;  %v44_v21 = vld [vmem:[%s2292_s0 + $0xf0] sm:$0xff]  ;;  %v45_v22 = vld [vmem:[%s2292_s0 + $0xf8] sm:$0xff]  ;;  %v74_v26 = vld [vmem:[%s2292_s0 + $0x1e0] sm:$0xff] }
  0x15   :  { %v72_v23 = vld [vmem:[%s2292_s0 + $0x1d0] sm:$0xff]  ;;  %v73_v24 = vld [vmem:[%s2292_s0 + $0x1d8] sm:$0xff]  ;;  %v93_v25 = vpack.c.bf16 %v45_v22, %v44_v21  ;;  %v75_v27 = vld [vmem:[%s2292_s0 + $0x1e8] sm:$0xff] }
  0x16   :  { %1374 = vmatmul.mubr.msk.bf16.gmra.mrb[8].mxu0 %vm118_vm0, %v83_v31  ;;  %v107_v28 = vpack.c.bf16 %v73_v24, %v72_v23  ;;  %v108_v29 = vpack.c.bf16 %v75_v27, %v74_v26  ;;  %v76_v30 = vld [vmem:[%s2292_s0 + $0x1f0] sm:$0xff]  ;;  %v77_v31 = vld [vmem:[%s2292_s0 + $0x1f8] sm:$0xff] }
  0x17   :  { %1377 = vmatprep.mubr.msk.bf16.mxu0 %vm118_vm0, %v84_v34  ;;  %v109_v32 = vpack.c.bf16 %v77_v31, %v76_v30 }
  0x19   :  { %1406 = vmatmul.mubr.msk.bf16.gmra.mrb[8].mxu1 %vm118_vm0, %v99_v47 }
  0x1a   :  { %1409 = vmatprep.mubr.msk.bf16.mxu1 %vm118_vm0, %v100_v48 }
  0x1e   :  { %1378 = vmatmul.mubr.msk.bf16.gmra.mrb[12].mxu0 %vm118_vm0, %v85_v43 }
  0x1f   :  { %1381 = vmatprep.mubr.msk.bf16.mxu0 %vm118_vm0, %v86_v46 }
  0x21   :  { %1410 = vmatmul.mubr.msk.bf16.gmra.mrb[12].mxu1 %vm118_vm0, %v101_v59 }
  0x22   :  { %1413 = vmatprep.mubr.msk.bf16.mxu1 %vm118_vm0, %v102_v60 }
  0x26   :  { %1382 = vmatmul.mubr.msk.bf16.gmra.mrb[16].mxu0 %vm118_vm0, %v87_v55 }
  0x27   :  { %1385 = vmatprep.mubr.msk.bf16.mxu0 %vm118_vm0, %v88_v58 }
  0x29   :  { %1414 = vmatmul.mubr.msk.bf16.gmra.mrb[16].mxu1 %vm118_vm0, %v103_v7 }
  0x2a   :  { %1417 = vmatprep.mubr.msk.bf16.mxu1 %vm118_vm0, %v104_v8 }
  0x2e   :  { %1386 = vmatmul.mubr.msk.bf16.gmra.mrb[20].mxu0 %vm118_vm0, %v89_v3 }
  0x2f   :  { %1389 = vmatprep.mubr.msk.bf16.mxu0 %vm118_vm0, %v90_v6 }
  0x31   :  { %1418 = vmatmul.mubr.msk.bf16.gmra.mrb[20].mxu1 %vm118_vm0, %v105_v19 }
  0x32   :  { %1421 = vmatprep.mubr.msk.bf16.mxu1 %vm118_vm0, %v106_v20 }
  0x36   :  { %1390 = vmatmul.mubr.msk.bf16.gmra.mrb[24].mxu0 %vm118_vm0, %v91_v15 }
  0x37   :  { %1393 = vmatprep.mubr.msk.bf16.mxu0 %vm118_vm0, %v92_v18 }
  0x39   :  { %1422 = vmatmul.mubr.msk.bf16.gmra.mrb[24].mxu1 %vm118_vm0, %v107_v28 }
  0x3a   :  { %1425 = vmatprep.mubr.msk.bf16.mxu1 %vm118_vm0, %v108_v29 }
  0x3e   :  { %1394 = vmatmul.mubr.msk.bf16.gmra.mrb[28].mxu0 %vm118_vm0, %v93_v25 }
  0x41   :  { %1426 = vmatmul.mubr.msk.bf16.gmra.mrb[28].mxu1 %vm118_vm0, %v109_v32 }
  0xd9   :  { %v1367_v33 = vpop.f32.mrb[0].mxu0 }
  0xda   :  { %v1268_v34 = vpack.c.bf16 %v1367_v33, %v1367_v33  ;;  %v249_v35 = vpop.f32.mrb[1].mxu0  ;;  %v640_v39 = vmul.f32 %v1367_v33, %v1367_v33  ;;  %v508_v48 = vsel %vm504_vm2, %v1367_v33, 0.0 }
  0xdb   :  { %v638_v36 = vmul.f32 %v249_v35, %v249_v35  ;;  %v1266_v37 = vpack.c.bf16 %v249_v35, %v249_v35  ;;  %v1368_v38 = vpop.f32.mrb[2].mxu0  ;;  %v505_v42 = vsel %vm504_vm2, %v249_v35, 0.0 }
  0xdc   :  { %1099 = vst.msk [vmem:[%s2293_s2 + $0x8] sm:$0xf] %vm1096_vm1, %v1268_v34  ;;  %v1269_v40 = vpack.c.bf16 %v1368_v38, %v1368_v38  ;;  %v252_v41 = vpop.f32.mrb[3].mxu0  ;;  %v641_v46 = vmul.f32 %v1368_v38, %v1368_v38  ;;  %v705_v53 = vsel %vm504_vm2, %v640_v39, 0.0  ;;  %v510_v55 = vsel %vm504_vm2, %v1368_v38, 0.0  ;;  %v1704_v1 = vpop.f32.mrb[0].mxu1 }
  0xdd   :  { %1097 = vst.msk [vmem:[%s2293_s2] sm:$0xf] %vm1096_vm1, %v1266_v37  ;;  %v506_v43 = vsel %vm504_vm2, %v252_v41, 0.0  ;;  %v639_v44 = vmul.f32 %v252_v41, %v252_v41  ;;  %v1267_v45 = vpack.c.bf16 %v252_v41, %v252_v41  ;;  %v702_v49 = vsel %vm504_vm2, %v638_v36, 0.0  ;;  %v1710_v4 = vpop.f32.mrb[1].mxu1 }
  0xde   :  { %1100 = vst.msk [vmem:[%s2293_s2 + $0xc] sm:$0xf] %vm1096_vm1, %v1269_v40  ;;  %v507_v47 = vadd.f32 %v506_v43, %v505_v42  ;;  %v707_v56 = vsel %vm504_vm2, %v641_v46, 0.0  ;;  %v1718_v9 = vpop.f32.mrb[2].mxu1  ;;  %v1300_v16 = vpack.c.bf16 %v1704_v1, %v1704_v1  ;;  %v1298_v20 = vpack.c.bf16 %v1710_v4, %v1710_v4 }
  0xdf   :  { %v703_v50 = vsel %vm504_vm2, %v639_v44, 0.0  ;;  %1098 = vst.msk [vmem:[%s2293_s2 + $0x4] sm:$0xf] %vm1096_vm1, %v1267_v45  ;;  %v1720_v14 = vpop.f32.mrb[3].mxu1 }
  0xe0   :  { %v509_v51 = vadd.f32 %v508_v48, %v507_v47  ;;  %v704_v52 = vadd.f32 %v703_v50, %v702_v49  ;;  %1131 = vst.msk [vmem:[%s2293_s2 + $0x88] sm:$0xf] %vm1096_vm1, %v1300_v16  ;;  %1129 = vst.msk [vmem:[%s2293_s2 + $0x80] sm:$0xf] %vm1096_vm1, %v1298_v20  ;;  %v1301_v50 = vpack.c.bf16 %v1718_v9, %v1718_v9 }
  0xe1   :  { %v1371_v54 = vpop.f32.mrb[4].mxu0 }
  0xe2   :  { %v706_v57 = vadd.f32 %v705_v53, %v704_v52  ;;  %v1272_v58 = vpack.c.bf16 %v1371_v54, %v1371_v54  ;;  %v265_v59 = vpop.f32.mrb[5].mxu0  ;;  %v511_v60 = vadd.f32 %v510_v55, %v509_v51  ;;  %v644_v10 = vmul.f32 %v1371_v54, %v1371_v54  ;;  %1132 = vst.msk [vmem:[%s2293_s2 + $0x8c] sm:$0xf] %vm1096_vm1, %v1301_v50 }
  0xe3   :  { %v512_v61 = vsel %vm504_vm2, %v265_v59, 0.0  ;;  %v642_v62 = vmul.f32 %v265_v59, %v265_v59  ;;  %v1270_v63 = vpack.c.bf16 %v265_v59, %v265_v59  ;;  %v1372_v0 = vpop.f32.mrb[6].mxu0  ;;  %v516_v17 = vsel %vm504_vm2, %v1371_v54, 0.0 }
  0xe4   :  { %1103 = vst.msk [vmem:[%s2293_s2 + $0x18] sm:$0xf] %vm1096_vm1, %v1272_v58  ;;  %v708_v2 = vadd.f32 %v707_v56, %v706_v57  ;;  %v268_v3 = vpop.f32.mrb[7].mxu0  ;;  %v513_v5 = vadd.f32 %v512_v61, %v511_v60  ;;  %v1273_v7 = vpack.c.bf16 %v1372_v0, %v1372_v0  ;;  %v645_v18 = vmul.f32 %v1372_v0, %v1372_v0  ;;  %v1747_v33 = vpop.f32.mrb[4].mxu1 }
  0xe5   :  { %v709_v6 = vsel %vm504_vm2, %v642_v62, 0.0  ;;  %1101 = vst.msk [vmem:[%s2293_s2 + $0x10] sm:$0xf] %vm1096_vm1, %v1270_v63  ;;  %v514_v8 = vsel %vm504_vm2, %v268_v3, 0.0  ;;  %v643_v12 = vmul.f32 %v268_v3, %v268_v3  ;;  %v1271_v13 = vpack.c.bf16 %v268_v3, %v268_v3  ;;  %v1754_v37 = vpop.f32.mrb[5].mxu1 }
  0xe6   :  { %v710_v11 = vadd.f32 %v709_v6, %v708_v2  ;;  %1104 = vst.msk [vmem:[%s2293_s2 + $0x1c] sm:$0xf] %vm1096_vm1, %v1273_v7  ;;  %v515_v15 = vadd.f32 %v514_v8, %v513_v5  ;;  %v713_v24 = vsel %vm504_vm2, %v644_v10, 0.0  ;;  %v518_v25 = vsel %vm504_vm2, %v1372_v0, 0.0  ;;  %v1757_v42 = vpop.f32.mrb[6].mxu1 }
  0xe7   :  { %v711_v19 = vsel %vm504_vm2, %v643_v12, 0.0  ;;  %1102 = vst.msk [vmem:[%s2293_s2 + $0x14] sm:$0xf] %vm1096_vm1, %v1271_v13  ;;  %v715_v34 = vsel %vm504_vm2, %v645_v18, 0.0  ;;  %v1764_v47 = vpop.f32.mrb[7].mxu1  ;;  %v1299_v54 = vpack.c.bf16 %v1720_v14, %v1720_v14 }
  0xe8   :  { %v517_v21 = vadd.f32 %v516_v17, %v515_v15  ;;  %v712_v22 = vadd.f32 %v711_v19, %v710_v11 }
  0xe9   :  { %v1375_v23 = vpop.f32.mrb[8].mxu0  ;;  %1130 = vst.msk [vmem:[%s2293_s2 + $0x84] sm:$0xf] %vm1096_vm1, %v1299_v54 }
  0xea   :  { %v1276_v26 = vpack.c.bf16 %v1375_v23, %v1375_v23  ;;  %v281_v27 = vpop.f32.mrb[9].mxu0  ;;  %v714_v28 = vadd.f32 %v713_v24, %v712_v22  ;;  %v519_v29 = vadd.f32 %v518_v25, %v517_v21  ;;  %v648_v43 = vmul.f32 %v1375_v23, %v1375_v23 }
  0xeb   :  { %v520_v30 = vsel %vm504_vm2, %v281_v27, 0.0  ;;  %v646_v31 = vmul.f32 %v281_v27, %v281_v27  ;;  %v1376_v32 = vpop.f32.mrb[10].mxu0  ;;  %v1274_v35 = vpack.c.bf16 %v281_v27, %v281_v27  ;;  %v524_v51 = vsel %vm504_vm2, %v1375_v23, 0.0 }
  0xec   :  { %1107 = vst.msk [vmem:[%s2293_s2 + $0x28] sm:$0xf] %vm1096_vm1, %v1276_v26  ;;  %v284_v36 = vpop.f32.mrb[11].mxu0  ;;  %v521_v38 = vadd.f32 %v520_v30, %v519_v29  ;;  %v716_v39 = vadd.f32 %v715_v34, %v714_v28  ;;  %v1277_v41 = vpack.c.bf16 %v1376_v32, %v1376_v32  ;;  %v649_v52 = vmul.f32 %v1376_v32, %v1376_v32  ;;  %v1791_v5 = vpop.f32.mrb[8].mxu1 }
  0xed   :  { %v717_v40 = vsel %vm504_vm2, %v646_v31, 0.0  ;;  %1105 = vst.msk [vmem:[%s2293_s2 + $0x20] sm:$0xf] %vm1096_vm1, %v1274_v35  ;;  %v522_v44 = vsel %vm504_vm2, %v284_v36, 0.0  ;;  %v647_v45 = vmul.f32 %v284_v36, %v284_v36  ;;  %v1275_v46 = vpack.c.bf16 %v284_v36, %v284_v36  ;;  %v1798_v10 = vpop.f32.mrb[9].mxu1 }
  0xee   :  { %v718_v48 = vadd.f32 %v717_v40, %v716_v39  ;;  %1108 = vst.msk [vmem:[%s2293_s2 + $0x2c] sm:$0xf] %vm1096_vm1, %v1277_v41  ;;  %v523_v49 = vadd.f32 %v522_v44, %v521_v38  ;;  %v721_v58 = vsel %vm504_vm2, %v648_v43, 0.0  ;;  %v526_v59 = vsel %vm504_vm2, %v1376_v32, 0.0  ;;  %v1801_v16 = vpop.f32.mrb[10].mxu1 }
  0xef   :  { %v719_v53 = vsel %vm504_vm2, %v647_v45, 0.0  ;;  %1106 = vst.msk [vmem:[%s2293_s2 + $0x24] sm:$0xf] %vm1096_vm1, %v1275_v46  ;;  %v723_v6 = vsel %vm504_vm2, %v649_v52, 0.0  ;;  %v1808_v21 = vpop.f32.mrb[11].mxu1  ;;  %v1304_v24 = vpack.c.bf16 %v1747_v33, %v1747_v33  ;;  %v1302_v28 = vpack.c.bf16 %v1754_v37, %v1754_v37 }
  0xf0   :  { %v525_v55 = vadd.f32 %v524_v51, %v523_v49  ;;  %v720_v56 = vadd.f32 %v719_v53, %v718_v48 }
  0xf1   :  { %v1379_v57 = vpop.f32.mrb[12].mxu0  ;;  %1135 = vst.msk [vmem:[%s2293_s2 + $0x98] sm:$0xf] %vm1096_vm1, %v1304_v24  ;;  %1133 = vst.msk [vmem:[%s2293_s2 + $0x90] sm:$0xf] %vm1096_vm1, %v1302_v28 }
  0xf2   :  { %v1280_v60 = vpack.c.bf16 %v1379_v57, %v1379_v57  ;;  %v297_v61 = vpop.f32.mrb[13].mxu0  ;;  %v722_v62 = vadd.f32 %v721_v58, %v720_v56  ;;  %v527_v63 = vadd.f32 %v526_v59, %v525_v55  ;;  %v652_v17 = vmul.f32 %v1379_v57, %v1379_v57 }
  0xf3   :  { %v528_v0 = vsel %vm504_vm2, %v297_v61, 0.0  ;;  %v650_v2 = vmul.f32 %v297_v61, %v297_v61  ;;  %v1380_v3 = vpop.f32.mrb[14].mxu0  ;;  %v1278_v7 = vpack.c.bf16 %v297_v61, %v297_v61  ;;  %v532_v25 = vsel %vm504_vm2, %v1379_v57, 0.0 }
  0xf4   :  { %1111 = vst.msk [vmem:[%s2293_s2 + $0x38] sm:$0xf] %vm1096_vm1, %v1280_v60  ;;  %v300_v8 = vpop.f32.mrb[15].mxu0  ;;  %v529_v11 = vadd.f32 %v528_v0, %v527_v63  ;;  %v724_v12 = vadd.f32 %v723_v6, %v722_v62  ;;  %v1281_v15 = vpack.c.bf16 %v1380_v3, %v1380_v3  ;;  %v653_v26 = vmul.f32 %v1380_v3, %v1380_v3  ;;  %v1835_v44 = vpop.f32.mrb[12].mxu1 }
  0xf5   :  { %v725_v13 = vsel %vm504_vm2, %v650_v2, 0.0  ;;  %1109 = vst.msk [vmem:[%s2293_s2 + $0x30] sm:$0xf] %vm1096_vm1, %v1278_v7  ;;  %v530_v18 = vsel %vm504_vm2, %v300_v8, 0.0  ;;  %v651_v19 = vmul.f32 %v300_v8, %v300_v8  ;;  %v1279_v20 = vpack.c.bf16 %v300_v8, %v300_v8  ;;  %v1842_v49 = vpop.f32.mrb[13].mxu1 }
  0xf6   :  { %v726_v22 = vadd.f32 %v725_v13, %v724_v12  ;;  %1112 = vst.msk [vmem:[%s2293_s2 + $0x3c] sm:$0xf] %vm1096_vm1, %v1281_v15  ;;  %v531_v23 = vadd.f32 %v530_v18, %v529_v11  ;;  %v729_v32 = vsel %vm504_vm2, %v652_v17, 0.0  ;;  %v534_v34 = vsel %vm504_vm2, %v1380_v3, 0.0  ;;  %v1845_v54 = vpop.f32.mrb[14].mxu1 }
  0xf7   :  { %v727_v27 = vsel %vm504_vm2, %v651_v19, 0.0  ;;  %1110 = vst.msk [vmem:[%s2293_s2 + $0x34] sm:$0xf] %vm1096_vm1, %v1279_v20  ;;  %v731_v45 = vsel %vm504_vm2, %v653_v26, 0.0  ;;  %v1852_v59 = vpop.f32.mrb[15].mxu1  ;;  %v1305_v62 = vpack.c.bf16 %v1757_v42, %v1757_v42  ;;  %v1303_v3 = vpack.c.bf16 %v1764_v47, %v1764_v47 }
  0xf8   :  { %v533_v29 = vadd.f32 %v532_v25, %v531_v23  ;;  %v728_v30 = vadd.f32 %v727_v27, %v726_v22 }
  0xf9   :  { %v1383_v31 = vpop.f32.mrb[16].mxu0  ;;  %1136 = vst.msk [vmem:[%s2293_s2 + $0x9c] sm:$0xf] %vm1096_vm1, %v1305_v62  ;;  %1134 = vst.msk [vmem:[%s2293_s2 + $0x94] sm:$0xf] %vm1096_vm1, %v1303_v3 }
  0xfa   :  { %v1284_v35 = vpack.c.bf16 %v1383_v31, %v1383_v31  ;;  %v313_v36 = vpop.f32.mrb[17].mxu0  ;;  %v730_v38 = vadd.f32 %v729_v32, %v728_v30  ;;  %v535_v39 = vadd.f32 %v534_v34, %v533_v29  ;;  %v656_v55 = vmul.f32 %v1383_v31, %v1383_v31 }
  0xfb   :  { %v536_v40 = vsel %vm504_vm2, %v313_v36, 0.0  ;;  %v654_v41 = vmul.f32 %v313_v36, %v313_v36  ;;  %v1384_v43 = vpop.f32.mrb[18].mxu0  ;;  %v1282_v46 = vpack.c.bf16 %v313_v36, %v313_v36  ;;  %v540_v63 = vsel %vm504_vm2, %v1383_v31, 0.0 }
  0xfc   :  { %1115 = vst.msk [vmem:[%s2293_s2 + $0x48] sm:$0xf] %vm1096_vm1, %v1284_v35  ;;  %v316_v48 = vpop.f32.mrb[19].mxu0  ;;  %v537_v50 = vadd.f32 %v536_v40, %v535_v39  ;;  %v732_v51 = vadd.f32 %v731_v45, %v730_v38  ;;  %v1285_v53 = vpack.c.bf16 %v1384_v43, %v1384_v43  ;;  %v657_v0 = vmul.f32 %v1384_v43, %v1384_v43  ;;  %v1879_v23 = vpop.f32.mrb[16].mxu1 }
  0xfd   :  { %v733_v52 = vsel %vm504_vm2, %v654_v41, 0.0  ;;  %1113 = vst.msk [vmem:[%s2293_s2 + $0x40] sm:$0xf] %vm1096_vm1, %v1282_v46  ;;  %v538_v56 = vsel %vm504_vm2, %v316_v48, 0.0  ;;  %v655_v57 = vmul.f32 %v316_v48, %v316_v48  ;;  %v1283_v58 = vpack.c.bf16 %v316_v48, %v316_v48  ;;  %v1886_v27 = vpop.f32.mrb[17].mxu1 }
  0xfe   :  { %v734_v60 = vadd.f32 %v733_v52, %v732_v51  ;;  %1116 = vst.msk [vmem:[%s2293_s2 + $0x4c] sm:$0xf] %vm1096_vm1, %v1285_v53  ;;  %v539_v61 = vadd.f32 %v538_v56, %v537_v50  ;;  %v737_v11 = vsel %vm504_vm2, %v656_v55, 0.0  ;;  %v542_v12 = vsel %vm504_vm2, %v1384_v43, 0.0  ;;  %v1889_v32 = vpop.f32.mrb[18].mxu1 }
  0xff   :  { %v735_v2 = vsel %vm504_vm2, %v655_v57, 0.0  ;;  %1114 = vst.msk [vmem:[%s2293_s2 + $0x44] sm:$0xf] %vm1096_vm1, %v1283_v58  ;;  %v739_v24 = vsel %vm504_vm2, %v657_v0, 0.0  ;;  %v1896_v39 = vpop.f32.mrb[19].mxu1  ;;  %v1308_v43 = vpack.c.bf16 %v1791_v5, %v1791_v5  ;;  %v1306_v50 = vpack.c.bf16 %v1798_v10, %v1798_v10 }
 0x100   :  { %v541_v6 = vadd.f32 %v540_v63, %v539_v61  ;;  %v736_v7 = vadd.f32 %v735_v2, %v734_v60 }
 0x101   :  { %v1387_v8 = vpop.f32.mrb[20].mxu0  ;;  %1139 = vst.msk [vmem:[%s2293_s2 + $0xa8] sm:$0xf] %vm1096_vm1, %v1308_v43  ;;  %1137 = vst.msk [vmem:[%s2293_s2 + $0xa0] sm:$0xf] %vm1096_vm1, %v1306_v50 }
 0x102   :  { %v1288_v13 = vpack.c.bf16 %v1387_v8, %v1387_v8  ;;  %v329_v15 = vpop.f32.mrb[21].mxu0  ;;  %v738_v17 = vadd.f32 %v737_v11, %v736_v7  ;;  %v543_v18 = vadd.f32 %v542_v12, %v541_v6  ;;  %v660_v34 = vmul.f32 %v1387_v8, %v1387_v8 }
 0x103   :  { %v544_v19 = vsel %vm504_vm2, %v329_v15, 0.0  ;;  %v658_v20 = vmul.f32 %v329_v15, %v329_v15  ;;  %v1388_v22 = vpop.f32.mrb[22].mxu0  ;;  %v1286_v25 = vpack.c.bf16 %v329_v15, %v329_v15  ;;  %v548_v45 = vsel %vm504_vm2, %v1387_v8, 0.0 }
 0x104   :  { %1119 = vst.msk [vmem:[%s2293_s2 + $0x58] sm:$0xf] %vm1096_vm1, %v1288_v13  ;;  %v332_v26 = vpop.f32.mrb[23].mxu0  ;;  %v545_v28 = vadd.f32 %v544_v19, %v543_v18  ;;  %v740_v29 = vadd.f32 %v739_v24, %v738_v17  ;;  %v1289_v31 = vpack.c.bf16 %v1388_v22, %v1388_v22  ;;  %v661_v46 = vmul.f32 %v1388_v22, %v1388_v22  ;;  %v1923_v2 = vpop.f32.mrb[20].mxu1 }
 0x105   :  { %v741_v30 = vsel %vm504_vm2, %v658_v20, 0.0  ;;  %1117 = vst.msk [vmem:[%s2293_s2 + $0x50] sm:$0xf] %vm1096_vm1, %v1286_v25  ;;  %v546_v35 = vsel %vm504_vm2, %v332_v26, 0.0  ;;  %v659_v36 = vmul.f32 %v332_v26, %v332_v26  ;;  %v1287_v38 = vpack.c.bf16 %v332_v26, %v332_v26  ;;  %v1930_v8 = vpop.f32.mrb[21].mxu1 }
 0x106   :  { %v742_v40 = vadd.f32 %v741_v30, %v740_v29  ;;  %1120 = vst.msk [vmem:[%s2293_s2 + $0x5c] sm:$0xf] %vm1096_vm1, %v1289_v31  ;;  %v547_v41 = vadd.f32 %v546_v35, %v545_v28  ;;  %v745_v55 = vsel %vm504_vm2, %v660_v34, 0.0  ;;  %v550_v56 = vsel %vm504_vm2, %v1388_v22, 0.0  ;;  %v1933_v17 = vpop.f32.mrb[22].mxu1 }
 0x107   :  { %v743_v48 = vsel %vm504_vm2, %v659_v36, 0.0  ;;  %1118 = vst.msk [vmem:[%s2293_s2 + $0x54] sm:$0xf] %vm1096_vm1, %v1287_v38  ;;  %v747_v3 = vsel %vm504_vm2, %v661_v46, 0.0  ;;  %v1940_v24 = vpop.f32.mrb[23].mxu1  ;;  %v1309_v28 = vpack.c.bf16 %v1801_v16, %v1801_v16  ;;  %v1307_v34 = vpack.c.bf16 %v1808_v21, %v1808_v21 }
 0x108   :  { %v549_v51 = vadd.f32 %v548_v45, %v547_v41  ;;  %v744_v52 = vadd.f32 %v743_v48, %v742_v40 }
 0x109   :  { %v1391_v53 = vpop.f32.mrb[24].mxu0  ;;  %1140 = vst.msk [vmem:[%s2293_s2 + $0xac] sm:$0xf] %vm1096_vm1, %v1309_v28  ;;  %1138 = vst.msk [vmem:[%s2293_s2 + $0xa4] sm:$0xf] %vm1096_vm1, %v1307_v34  ;;  %v568_v34 = vsel %vm504_vm2, %v1710_v4, 0.0 }
 0x10a   :  { %v1292_v57 = vpack.c.bf16 %v1391_v53, %v1391_v53  ;;  %v345_v58 = vpop.f32.mrb[25].mxu0  ;;  %v746_v60 = vadd.f32 %v745_v55, %v744_v52  ;;  %v551_v61 = vadd.f32 %v550_v56, %v549_v51  ;;  %v664_v18 = vmul.f32 %v1391_v53, %v1391_v53 }
 0x10b   :  { %v552_v62 = vsel %vm504_vm2, %v345_v58, 0.0  ;;  %v662_v63 = vmul.f32 %v345_v58, %v345_v58  ;;  %v1392_v0 = vpop.f32.mrb[26].mxu0  ;;  %v1290_v6 = vpack.c.bf16 %v345_v58, %v345_v58  ;;  %v556_v29 = vsel %vm504_vm2, %v1391_v53, 0.0 }
 0x10c   :  { %1123 = vst.msk [vmem:[%s2293_s2 + $0x68] sm:$0xf] %vm1096_vm1, %v1292_v57  ;;  %v348_v7 = vpop.f32.mrb[27].mxu0  ;;  %v553_v11 = vadd.f32 %v552_v62, %v551_v61  ;;  %v748_v12 = vadd.f32 %v747_v3, %v746_v60  ;;  %v1293_v15 = vpack.c.bf16 %v1392_v0, %v1392_v0  ;;  %v665_v30 = vmul.f32 %v1392_v0, %v1392_v0  ;;  %v1967_v53 = vpop.f32.mrb[24].mxu1 }
 0x10d   :  { %v749_v13 = vsel %vm504_vm2, %v662_v63, 0.0  ;;  %1121 = vst.msk [vmem:[%s2293_s2 + $0x60] sm:$0xf] %vm1096_vm1, %v1290_v6  ;;  %v554_v19 = vsel %vm504_vm2, %v348_v7, 0.0  ;;  %v663_v20 = vmul.f32 %v348_v7, %v348_v7  ;;  %v1291_v22 = vpack.c.bf16 %v348_v7, %v348_v7  ;;  %v1974_v58 = vpop.f32.mrb[25].mxu1 }
 0x10e   :  { %v750_v25 = vadd.f32 %v749_v13, %v748_v12  ;;  %1124 = vst.msk [vmem:[%s2293_s2 + $0x6c] sm:$0xf] %vm1096_vm1, %v1293_v15  ;;  %v555_v26 = vadd.f32 %v554_v19, %v553_v11  ;;  %v753_v40 = vsel %vm504_vm2, %v664_v18, 0.0  ;;  %v558_v41 = vsel %vm504_vm2, %v1392_v0, 0.0  ;;  %v1977_v0 = vpop.f32.mrb[26].mxu1 }
 0x10f   :  { %v751_v31 = vsel %vm504_vm2, %v663_v20, 0.0  ;;  %1122 = vst.msk [vmem:[%s2293_s2 + $0x64] sm:$0xf] %vm1096_vm1, %v1291_v22  ;;  %v755_v55 = vsel %vm504_vm2, %v665_v30, 0.0  ;;  %v1984_v12 = vpop.f32.mrb[27].mxu1  ;;  %v670_v18 = vmul.f32 %v1710_v4, %v1710_v4  ;;  %v1312_v19 = vpack.c.bf16 %v1835_v44, %v1835_v44 }
 0x110   :  { %v557_v35 = vadd.f32 %v556_v29, %v555_v26  ;;  %v752_v36 = vadd.f32 %v751_v31, %v750_v25  ;;  %v1310_v26 = vpack.c.bf16 %v1842_v49, %v1842_v49  ;;  %v671_v4 = vmul.f32 %v1720_v14, %v1720_v14 }
 0x111   :  { %v1395_v38 = vpop.f32.mrb[28].mxu0  ;;  %1143 = vst.msk [vmem:[%s2293_s2 + $0xb8] sm:$0xf] %vm1096_vm1, %v1312_v19  ;;  %v576_v19 = vsel %vm504_vm2, %v1754_v37, 0.0 }
 0x112   :  { %v1296_v43 = vpack.c.bf16 %v1395_v38, %v1395_v38  ;;  %v361_v45 = vpop.f32.mrb[29].mxu0  ;;  %v754_v46 = vadd.f32 %v753_v40, %v752_v36  ;;  %v559_v48 = vadd.f32 %v558_v41, %v557_v35  ;;  %v668_v3 = vmul.f32 %v1395_v38, %v1395_v38  ;;  %1141 = vst.msk [vmem:[%s2293_s2 + $0xb0] sm:$0xf] %vm1096_vm1, %v1310_v26 }
 0x113   :  { %v560_v50 = vsel %vm504_vm2, %v361_v45, 0.0  ;;  %v666_v51 = vmul.f32 %v361_v45, %v361_v45  ;;  %v1396_v52 = vpop.f32.mrb[30].mxu0  ;;  %v1294_v56 = vpack.c.bf16 %v361_v45, %v361_v45  ;;  %v564_v20 = vsel %vm504_vm2, %v1395_v38, 0.0 }
 0x114   :  { %1127 = vst.msk [vmem:[%s2293_s2 + $0x78] sm:$0xf] %vm1096_vm1, %v1296_v43  ;;  %v364_v57 = vpop.f32.mrb[31].mxu0  ;;  %v561_v60 = vadd.f32 %v560_v50, %v559_v48  ;;  %v756_v61 = vadd.f32 %v755_v55, %v754_v46  ;;  %v1297_v63 = vpack.c.bf16 %v1396_v52, %v1396_v52  ;;  %v669_v22 = vmul.f32 %v1396_v52, %v1396_v52  ;;  %v2018_v41 = vpop.f32.mrb[28].mxu1 }
 0x115   :  { %v757_v62 = vsel %vm504_vm2, %v666_v51, 0.0  ;;  %1125 = vst.msk [vmem:[%s2293_s2 + $0x70] sm:$0xf] %vm1096_vm1, %v1294_v56  ;;  %v562_v6 = vsel %vm504_vm2, %v364_v57, 0.0  ;;  %v667_v7 = vmul.f32 %v364_v57, %v364_v57  ;;  %v1295_v11 = vpack.c.bf16 %v364_v57, %v364_v57  ;;  %v2030_v48 = vpop.f32.mrb[29].mxu1 }
 0x116   :  { %v758_v13 = vadd.f32 %v757_v62, %v756_v61  ;;  %1128 = vst.msk [vmem:[%s2293_s2 + $0x7c] sm:$0xf] %vm1096_vm1, %v1297_v63  ;;  %v563_v15 = vadd.f32 %v562_v6, %v561_v60  ;;  %v761_v30 = vsel %vm504_vm2, %v668_v3, 0.0  ;;  %v566_v31 = vsel %vm504_vm2, %v1396_v52, 0.0  ;;  %v2036_v52 = vpop.f32.mrb[30].mxu1 }
 0x117   :  { %v759_v25 = vsel %vm504_vm2, %v667_v7, 0.0  ;;  %1126 = vst.msk [vmem:[%s2293_s2 + $0x74] sm:$0xf] %vm1096_vm1, %v1295_v11  ;;  %v1313_v35 = vpack.c.bf16 %v1845_v54, %v1845_v54  ;;  %v1311_v40 = vpack.c.bf16 %v1852_v59, %v1852_v59  ;;  %v763_v43 = vsel %vm504_vm2, %v669_v22, 0.0  ;;  %v2048_v60 = vpop.f32.mrb[31].mxu1 }
 0x118   :  { %v565_v28 = vadd.f32 %v564_v20, %v563_v15  ;;  %v760_v29 = vadd.f32 %v759_v25, %v758_v13  ;;  %v765_v45 = vsel %vm504_vm2, %v670_v18, 0.0  ;;  %v1316_v46 = vpack.c.bf16 %v1879_v23, %v1879_v23 }
 0x119   :  { %1144 = vst.msk [vmem:[%s2293_s2 + $0xbc] sm:$0xf] %vm1096_vm1, %v1313_v35  ;;  %1142 = vst.msk [vmem:[%s2293_s2 + $0xb4] sm:$0xf] %vm1096_vm1, %v1311_v40  ;;  %v672_v55 = vmul.f32 %v1704_v1, %v1704_v1  ;;  %v570_v56 = vsel %vm504_vm2, %v1720_v14, 0.0  ;;  %v1314_v57 = vpack.c.bf16 %v1886_v27, %v1886_v27  ;;  %v572_v61 = vsel %vm504_vm2, %v1704_v1, 0.0 }
 0x11a   :  { %v762_v36 = vadd.f32 %v761_v30, %v760_v29  ;;  %v567_v38 = vadd.f32 %v566_v31, %v565_v28  ;;  %1147 = vst.msk [vmem:[%s2293_s2 + $0xc8] sm:$0xf] %vm1096_vm1, %v1316_v46  ;;  %v1317_v3 = vpack.c.bf16 %v1889_v32, %v1889_v32  ;;  %v673_v14 = vmul.f32 %v1718_v9, %v1718_v9 }
 0x11b   :  { %v767_v6 = vsel %vm504_vm2, %v671_v4, 0.0  ;;  %v674_v7 = vmul.f32 %v1754_v37, %v1754_v37  ;;  %1145 = vst.msk [vmem:[%s2293_s2 + $0xc0] sm:$0xf] %vm1096_vm1, %v1314_v57  ;;  %v1315_v1 = vpack.c.bf16 %v1896_v39, %v1896_v39  ;;  %v769_v15 = vsel %vm504_vm2, %v672_v55, 0.0 }
 0x11c   :  { %v569_v50 = vadd.f32 %v568_v34, %v567_v38  ;;  %v764_v51 = vadd.f32 %v763_v43, %v762_v36  ;;  %1148 = vst.msk [vmem:[%s2293_s2 + $0xcc] sm:$0xf] %vm1096_vm1, %v1317_v3  ;;  %v574_v18 = vsel %vm504_vm2, %v1718_v9, 0.0  ;;  %v1320_v20 = vpack.c.bf16 %v1923_v2, %v1923_v2 }
 0x11d   :  { %1146 = vst.msk [vmem:[%s2293_s2 + $0xc4] sm:$0xf] %vm1096_vm1, %v1315_v1  ;;  %v1318_v26 = vpack.c.bf16 %v1930_v8, %v1930_v8  ;;  %v771_v28 = vsel %vm504_vm2, %v673_v14, 0.0  ;;  %v773_v9 = vsel %vm504_vm2, %v674_v7, 0.0  ;;  %v675_v37 = vmul.f32 %v1764_v47, %v1764_v47 }
 0x11e   :  { %v766_v62 = vadd.f32 %v765_v45, %v764_v51  ;;  %v571_v63 = vadd.f32 %v570_v56, %v569_v50  ;;  %1151 = vst.msk [vmem:[%s2293_s2 + $0xd8] sm:$0xf] %vm1096_vm1, %v1320_v20  ;;  %v1321_v29 = vpack.c.bf16 %v1933_v17, %v1933_v17  ;;  %v676_v34 = vmul.f32 %v1747_v33, %v1747_v33 }
 0x11f   :  { %1149 = vst.msk [vmem:[%s2293_s2 + $0xd0] sm:$0xf] %vm1096_vm1, %v1318_v26  ;;  %v578_v35 = vsel %vm504_vm2, %v1764_v47, 0.0  ;;  %v1319_v36 = vpack.c.bf16 %v1940_v24, %v1940_v24  ;;  %v580_v38 = vsel %vm504_vm2, %v1747_v33, 0.0  ;;  %v1324_v45 = vpack.c.bf16 %v1967_v53, %v1967_v53 }
 0x120   :  { %v573_v11 = vadd.f32 %v572_v61, %v571_v63  ;;  %v768_v13 = vadd.f32 %v767_v6, %v766_v62  ;;  %1152 = vst.msk [vmem:[%s2293_s2 + $0xdc] sm:$0xf] %vm1096_vm1, %v1321_v29  ;;  %v677_v4 = vmul.f32 %v1757_v42, %v1757_v42  ;;  %v775_v47 = vsel %vm504_vm2, %v675_v37, 0.0 }
 0x121   :  { %v678_v46 = vmul.f32 %v1798_v10, %v1798_v10  ;;  %1150 = vst.msk [vmem:[%s2293_s2 + $0xd4] sm:$0xf] %vm1096_vm1, %v1319_v36  ;;  %v1322_v33 = vpack.c.bf16 %v1974_v58, %v1974_v58  ;;  %1155 = vst.msk [vmem:[%s2293_s2 + $0xe8] sm:$0xf] %vm1096_vm1, %v1324_v45  ;;  %v777_v55 = vsel %vm504_vm2, %v676_v34, 0.0  ;;  %v582_v56 = vsel %vm504_vm2, %v1757_v42, 0.0 }
 0x122   :  { %v770_v22 = vadd.f32 %v769_v15, %v768_v13  ;;  %v575_v25 = vadd.f32 %v574_v18, %v573_v11  ;;  %v584_v57 = vsel %vm504_vm2, %v1798_v10, 0.0  ;;  %v1325_v61 = vpack.c.bf16 %v1977_v0, %v1977_v0 }
 0x123   :  { %1153 = vst.msk [vmem:[%s2293_s2 + $0xe0] sm:$0xf] %vm1096_vm1, %v1322_v33  ;;  %v1323_v3 = vpack.c.bf16 %v1984_v12, %v1984_v12  ;;  %v779_v14 = vsel %vm504_vm2, %v677_v4, 0.0  ;;  %v781_v42 = vsel %vm504_vm2, %v678_v46, 0.0  ;;  %v679_v10 = vmul.f32 %v1808_v21, %v1808_v21 }
 0x124   :  { %v577_v30 = vadd.f32 %v576_v19, %v575_v25  ;;  %v772_v31 = vadd.f32 %v771_v28, %v770_v22  ;;  %1156 = vst.msk [vmem:[%s2293_s2 + $0xec] sm:$0xf] %vm1096_vm1, %v1325_v61  ;;  %v1328_v6 = vpack.c.bf16 %v2018_v41, %v2018_v41  ;;  %v680_v11 = vmul.f32 %v1791_v5, %v1791_v5 }
 0x125   :  { %1154 = vst.msk [vmem:[%s2293_s2 + $0xe4] sm:$0xf] %vm1096_vm1, %v1323_v3  ;;  %v586_v13 = vsel %vm504_vm2, %v1808_v21, 0.0  ;;  %v1326_v15 = vpack.c.bf16 %v2030_v48, %v2030_v48  ;;  %v1329_v20 = vpack.c.bf16 %v2036_v52, %v2036_v52  ;;  %v588_v22 = vsel %vm504_vm2, %v1791_v5, 0.0 }
 0x126   :  { %v774_v40 = vadd.f32 %v773_v9, %v772_v31  ;;  %v579_v43 = vadd.f32 %v578_v35, %v577_v30  ;;  %1159 = vst.msk [vmem:[%s2293_s2 + $0xf8] sm:$0xf] %vm1096_vm1, %v1328_v6  ;;  %v681_v25 = vmul.f32 %v1801_v16, %v1801_v16  ;;  %v783_v21 = vsel %vm504_vm2, %v679_v10, 0.0 }
 0x127   :  { %v682_v26 = vmul.f32 %v1842_v49, %v1842_v49  ;;  %1157 = vst.msk [vmem:[%s2293_s2 + $0xf0] sm:$0xf] %vm1096_vm1, %v1326_v15  ;;  %1160 = vst.msk [vmem:[%s2293_s2 + $0xfc] sm:$0xf] %vm1096_vm1, %v1329_v20  ;;  %v785_v5 = vsel %vm504_vm2, %v680_v11, 0.0  ;;  %v590_v37 = vsel %vm504_vm2, %v1801_v16, 0.0  ;;  %v1327_v30 = vpack.c.bf16 %v2048_v60, %v2048_v60 }
 0x128   :  { %v581_v50 = vadd.f32 %v580_v38, %v579_v43  ;;  %v776_v51 = vadd.f32 %v775_v47, %v774_v40  ;;  %v592_v29 = vsel %vm504_vm2, %v1842_v49, 0.0  ;;  %v787_v35 = vsel %vm504_vm2, %v681_v25, 0.0 }
 0x129   :  { %v789_v36 = vsel %vm504_vm2, %v682_v26, 0.0  ;;  %v683_v38 = vmul.f32 %v1852_v59, %v1852_v59  ;;  %1158 = vst.msk [vmem:[%s2293_s2 + $0xf4] sm:$0xf] %vm1096_vm1, %v1327_v30  ;;  %v684_v49 = vmul.f32 %v1835_v44, %v1835_v44  ;;  %v594_v43 = vsel %vm504_vm2, %v1852_v59, 0.0 }
 0x12a   :  { %v778_v62 = vadd.f32 %v777_v55, %v776_v51  ;;  %v583_v63 = vadd.f32 %v582_v56, %v581_v50  ;;  %v596_v47 = vsel %vm504_vm2, %v1835_v44, 0.0  ;;  %v685_v46 = vmul.f32 %v1845_v54, %v1845_v54 }
 0x12b   :  { %v791_v33 = vsel %vm504_vm2, %v683_v38, 0.0  ;;  %v686_v50 = vmul.f32 %v1886_v27, %v1886_v27  ;;  %v793_v56 = vsel %vm504_vm2, %v684_v49, 0.0  ;;  %v598_v59 = vsel %vm504_vm2, %v1845_v54, 0.0 }
 0x12c   :  { %v585_v7 = vadd.f32 %v584_v57, %v583_v63  ;;  %v780_v1 = vadd.f32 %v779_v14, %v778_v62  ;;  %v600_v57 = vsel %vm504_vm2, %v1886_v27, 0.0  ;;  %v795_v62 = vsel %vm504_vm2, %v685_v46, 0.0 }
 0x12d   :  { %v797_v63 = vsel %vm504_vm2, %v686_v50, 0.0  ;;  %v687_v3 = vmul.f32 %v1896_v39, %v1896_v39  ;;  %v688_v10 = vmul.f32 %v1879_v23, %v1879_v23  ;;  %v602_v54 = vsel %vm504_vm2, %v1896_v39, 0.0 }
 0x12e   :  { %v782_v18 = vadd.f32 %v781_v42, %v780_v1  ;;  %v587_v19 = vadd.f32 %v586_v13, %v585_v7  ;;  %v604_v27 = vsel %vm504_vm2, %v1879_v23, 0.0  ;;  %v689_v1 = vmul.f32 %v1889_v32, %v1889_v32 }
 0x12f   :  { %v799_v11 = vsel %vm504_vm2, %v687_v3, 0.0  ;;  %v690_v13 = vmul.f32 %v1930_v8, %v1930_v8  ;;  %v606_v39 = vsel %vm504_vm2, %v1889_v32, 0.0  ;;  %v608_v20 = vsel %vm504_vm2, %v1930_v8, 0.0 }
 0x130   :  { %v589_v28 = vadd.f32 %v588_v22, %v587_v19  ;;  %v784_v9 = vadd.f32 %v783_v21, %v782_v18  ;;  %v801_v19 = vsel %vm504_vm2, %v688_v10, 0.0  ;;  %v803_v25 = vsel %vm504_vm2, %v689_v1, 0.0 }
 0x131   :  { %v805_v21 = vsel %vm504_vm2, %v690_v13, 0.0  ;;  %v691_v26 = vmul.f32 %v1940_v24, %v1940_v24  ;;  %v610_v32 = vsel %vm504_vm2, %v1940_v24, 0.0  ;;  %v612_v8 = vsel %vm504_vm2, %v1923_v2, 0.0 }
 0x132   :  { %v786_v31 = vadd.f32 %v785_v5, %v784_v9  ;;  %v591_v34 = vadd.f32 %v590_v37, %v589_v28  ;;  %v692_v5 = vmul.f32 %v1923_v2, %v1923_v2  ;;  %v693_v30 = vmul.f32 %v1933_v17, %v1933_v17 }
 0x133   :  { %v614_v24 = vsel %vm504_vm2, %v1933_v17, 0.0  ;;  %v696_v46 = vmul.f32 %v1967_v53, %v1967_v53  ;;  %v618_v17 = vsel %vm504_vm2, %v1984_v12, 0.0 }
 0x134   :  { %v593_v16 = vadd.f32 %v592_v29, %v591_v34  ;;  %v788_v40 = vadd.f32 %v787_v35, %v786_v31  ;;  %v807_v31 = vsel %vm504_vm2, %v691_v26, 0.0  ;;  %v694_v34 = vmul.f32 %v1974_v58, %v1974_v58 }
 0x135   :  { %v809_v38 = vsel %vm504_vm2, %v692_v5, 0.0  ;;  %v811_v49 = vsel %vm504_vm2, %v693_v30, 0.0 }
 0x136   :  { %v790_v45 = vadd.f32 %v789_v36, %v788_v40  ;;  %v595_v4 = vadd.f32 %v594_v43, %v593_v16  ;;  %v616_v16 = vsel %vm504_vm2, %v1974_v58, 0.0  ;;  %v813_v43 = vsel %vm504_vm2, %v694_v34, 0.0 }
 0x137   :  { %v620_v58 = vsel %vm504_vm2, %v1967_v53, 0.0 }
 0x138   :  { %v597_v51 = vadd.f32 %v596_v47, %v595_v4  ;;  %v792_v55 = vadd.f32 %v791_v33, %v790_v45  ;;  %v695_v45 = vmul.f32 %v1984_v12, %v1984_v12  ;;  %v622_v12 = vsel %vm504_vm2, %v1977_v0, 0.0 }
 0x13a   :  { %v794_v61 = vadd.f32 %v793_v56, %v792_v55  ;;  %v599_v44 = vadd.f32 %v598_v59, %v597_v51  ;;  %v697_v51 = vmul.f32 %v1977_v0, %v1977_v0  ;;  %v815_v55 = vsel %vm504_vm2, %v695_v45, 0.0 }
 0x13b   :  { %v698_v56 = vmul.f32 %v2030_v48, %v2030_v48  ;;  %v626_v0 = vsel %vm504_vm2, %v2048_v60, 0.0 }
 0x13c   :  { %v601_v14 = vadd.f32 %v600_v57, %v599_v44  ;;  %v796_v42 = vadd.f32 %v795_v62, %v794_v61  ;;  %v817_v61 = vsel %vm504_vm2, %v696_v46, 0.0  ;;  %v624_v44 = vsel %vm504_vm2, %v2030_v48, 0.0 }
 0x13d   :  { %v821_v3 = vsel %vm504_vm2, %v698_v56, 0.0  ;;  %v628_v48 = vsel %vm504_vm2, %v2018_v41, 0.0 }
 0x13e   :  { %v798_v6 = vadd.f32 %v797_v63, %v796_v42  ;;  %v603_v7 = vadd.f32 %v602_v54, %v601_v14  ;;  %v819_v63 = vsel %vm504_vm2, %v697_v51, 0.0  ;;  %v699_v14 = vmul.f32 %v2048_v60, %v2048_v60 }
 0x13f   :  { %v700_v54 = vmul.f32 %v2018_v41, %v2018_v41 }
 0x140   :  { %v605_v15 = vadd.f32 %v604_v27, %v603_v7  ;;  %v800_v18 = vadd.f32 %v799_v11, %v798_v6  ;;  %v701_v27 = vmul.f32 %v2036_v52, %v2036_v52  ;;  %v823_v1 = vsel %vm504_vm2, %v699_v14, 0.0 }
 0x142   :  { %v802_v22 = vadd.f32 %v801_v19, %v800_v18  ;;  %v607_v23 = vadd.f32 %v606_v39, %v605_v15  ;;  %v825_v15 = vsel %vm504_vm2, %v700_v54, 0.0  ;;  %v630_v18 = vsel %vm504_vm2, %v2036_v52, 0.0 }
 0x143   :  { %v827_v60 = vsel %vm504_vm2, %v701_v27, 0.0 }
 0x144   :  { %v609_v28 = vadd.f32 %v608_v20, %v607_v23  ;;  %v804_v9 = vadd.f32 %v803_v25, %v802_v22 }
 0x146   :  { %v806_v37 = vadd.f32 %v805_v21, %v804_v9  ;;  %v611_v29 = vadd.f32 %v610_v32, %v609_v28 }
 0x148   :  { %v613_v35 = vadd.f32 %v612_v8, %v611_v29  ;;  %v808_v36 = vadd.f32 %v807_v31, %v806_v37 }
 0x14a   :  { %v810_v40 = vadd.f32 %v809_v38, %v808_v36  ;;  %v615_v2 = vadd.f32 %v614_v24, %v613_v35 }
 0x14c   :  { %v617_v4 = vadd.f32 %v616_v16, %v615_v2  ;;  %v812_v47 = vadd.f32 %v811_v49, %v810_v40 }
 0x14e   :  { %v814_v33 = vadd.f32 %v813_v43, %v812_v47  ;;  %v619_v50 = vadd.f32 %v618_v17, %v617_v4 }
 0x150   :  { %v621_v59 = vadd.f32 %v620_v58, %v619_v50  ;;  %v816_v57 = vadd.f32 %v815_v55, %v814_v33 }
 0x152   :  { %v818_v62 = vadd.f32 %v817_v61, %v816_v57  ;;  %v623_v53 = vadd.f32 %v622_v12, %v621_v59 }
 0x154   :  { %v625_v42 = vadd.f32 %v624_v44, %v623_v53  ;;  %v820_v10 = vadd.f32 %v819_v63, %v818_v62 }
 0x156   :  { %v822_v6 = vadd.f32 %v821_v3, %v820_v10  ;;  %v627_v7 = vadd.f32 %v626_v0, %v625_v42 }
 0x158   :  { %v629_v11 = vadd.f32 %v628_v48, %v627_v7  ;;  %v824_v13 = vadd.f32 %v823_v1, %v822_v6 }
 0x15a   :  { %v631_v19 = vadd.f32 %v630_v18, %v629_v11  ;;  %v826_v39 = vadd.f32 %v825_v15, %v824_v13 }
 0x15c   :  { %v632_v20 = vrot.slane %v631_v19, 4  ;;  %v828_v22 = vadd.f32 %v827_v60, %v826_v39 }
 0x15e   :  { %v633_v23 = vadd.f32 %v632_v20, %v631_v19  ;;  %v829_v41 = vrot.slane %v828_v22, 4 }
 0x160   :  { %v634_v25 = vrot.slane %v633_v23, 2  ;;  %v830_v21 = vadd.f32 %v829_v41, %v828_v22 }
 0x162   :  { %v635_v26 = vadd.f32 %v634_v25, %v633_v23  ;;  %v831_v28 = vrot.slane %v830_v21, 2 }
 0x164   :  { %v636_v9 = vrot.slane %v635_v26, 1  ;;  %v832_v5 = vadd.f32 %v831_v28, %v830_v21 }
 0x166   :  { %v833_v32 = vrot.slane %v832_v5, 1  ;;  %v637_v37 = vadd.f32 %v636_v9, %v635_v26 }
 0x168   :  { %v834_v29 = vadd.f32 %v833_v32, %v832_v5 }
 0x16a   :  { %v836_v52 = vsel %vm835_vm3, %v637_v37, %v834_v29 }
 0x16b   :  { %v838_v8 = vsel %vm837_vm4, %v836_v52, 0.0 }
 0x16c   :  { %839 = vst.msk [vmem:[%s2294_s3] sm:$0xff] %vm504_vm2, %v838_v8 }

</bundles_post_ra>
